<compile_context>
chip_gen: v7x
topology: tpu7x:2x2x1
jax: 0.10.0
libtpu: 0.0.40
codegen_flags: <defaults>
</compile_context>

<pallas_src>
import jax
import jax.numpy as jnp
from jax.experimental import pallas as pl
from jax.experimental.pallas import tpu as pltpu


HIDDEN = 32


def _round_up(n, m):
    return ((n + m - 1) // m) * m


def _choose_block_rows(B, block_rows):
    """Batch tile: large (DMA-efficient), multiple of 16 (bf16 sublane tiling),
    and split so a v7x megacore sees >= 2 grid steps when B is large."""
    full = _round_up(B, 16)
    if full > block_rows:
        return block_rows                      # multi-step grid over the batch
    if B >= 512:
        return _round_up(pl.cdiv(B, 2), 128)   # >=2 steps for the 2 TCs on v7x
    return max(16, full)                       # small batch: single tile


def head_kernel(x_ref, w1_ref, b1_ref, w2_ref, b2_ref, w3_ref, b3_ref, o_ref):
    # Layer 1: bf16 MXU matmul, f32 accumulation; bias + ReLU on the VPU in f32.
    h = jnp.dot(x_ref[...], w1_ref[...], preferred_element_type=jnp.float32)
    h = jnp.maximum(h + b1_ref[...], 0.0)

    # Layer 2: same pattern (re-quantize the activation to bf16 for the MXU).
    h = jnp.dot(h.astype(w2_ref.dtype), w2_ref[...],
                preferred_element_type=jnp.float32)
    h = jnp.maximum(h + b2_ref[...], 0.0)

    # Layer 3 (out features == 1), lane-dense: w3 @ h^T on the MXU so the Bt
    # outputs land along the 128-lane axis (unmasked stores, dense HBM row).
    # w3 arrives zero-padded to (8, 32); only row 0 of the result is real.
    h3 = jax.lax.dot_general(
        w3_ref[...], h,
        dimension_numbers=(((1,), (1,)), ((), ())),
        preferred_element_type=jnp.float32)            # (8, Bt)
    row = h3[0:1, :] + b3_ref[...]                     # (1, Bt)
    o_ref[...] = jnp.maximum(row, 0.0).astype(o_ref.dtype)


def head_forward(x, params, *, block_rows=8192):
    """x: [B, D] float32.  Returns [B, 1] float32 (PyTorch nn.Linear semantics)."""
    B, D = x.shape
    H = params["w1"].shape[1]

    # bf16 input stream / matmul weights (f32 accumulation inside the kernel);
    # biases and the tiny third-layer weights stay in f32.
    x_bf = x.astype(jnp.bfloat16)
    w1 = params["w1"].astype(jnp.bfloat16)
    w2 = params["w2"].astype(jnp.bfloat16)
    b1 = params["b1"].reshape(1, H).astype(jnp.float32)
    b2 = params["b2"].reshape(1, H).astype(jnp.float32)
    # w3 zero-padded to (8, 32) so the layer-3 MXU operands are tile-aligned.
    w3p = jnp.zeros((8, H), jnp.float32).at[0].set(
        params["w3"].reshape(H).astype(jnp.float32))
    b3 = params["b3"].reshape(1, 1).astype(jnp.float32)

    Bt = _choose_block_rows(B, block_rows)
    num_blocks = pl.cdiv(B, Bt)
    grid = (num_blocks,)

    def const_spec(arr):
        return pl.BlockSpec(arr.shape, lambda i: (0, 0))

    itemsize = lambda a: a.size * a.dtype.itemsize
    cost = pl.CostEstimate(
        flops=2 * B * (D * H + H * H + H),
        transcendentals=0,
        bytes_accessed=itemsize(x_bf) + num_blocks * Bt * 4
        + sum(itemsize(a) for a in (w1, b1, w2, b2, w3p, b3)),
    )

    out_rows = pl.pallas_call(
        head_kernel,
        out_shape=jax.ShapeDtypeStruct((num_blocks, Bt), jnp.float32),
        grid=grid,
        in_specs=[
            pl.BlockSpec((Bt, D), lambda i: (i, 0)),     # x: tiled over batch
            const_spec(w1), const_spec(b1),              # weights: VMEM-resident
            const_spec(w2), const_spec(b2),
            const_spec(w3p), const_spec(b3),
        ],
        # Lane-dense output: one dense (1, Bt) f32 row per grid step.
        out_specs=pl.BlockSpec((1, Bt), lambda i: (i, 0)),
        compiler_params=pltpu.CompilerParams(
            dimension_semantics=("parallel",),           # shard batch tiles across TCs
            vmem_limit_bytes=32 * 1024 * 1024,
        ),
        cost_estimate=cost,
    )(x_bf, w1, b1, w2, b2, w3p, b3)

    # (num_blocks, Bt) -> (B, 1); only the trailing rows of the last block are
    # padding, so a flat slice recovers the true batch.
    return out_rows.reshape(-1)[:B].reshape(B, 1)


def future_rewards_head(x, params):
    """Mirrors FutureRewardsEstimator's Heads==1 path on the post-HSE sequence:
    head(x) followed by squeeze(1) -> shape [T]."""
    return head_forward(x, params)[:, 0]


def init_params(key, input_size, hidden=HIDDEN):
    """Deterministic init mirroring nn.Linear shapes (stored transposed: [in, out])."""
    k1, k2, k3, k4, k5, k6 = jax.random.split(key, 6)

    def linear_init(kw, kb, fan_in, fan_out):
        bound = 1.0 / jnp.sqrt(fan_in)
        w = jax.random.uniform(kw, (fan_in, fan_out), jnp.float32, -bound, bound)
        b = jax.random.uniform(kb, (1, fan_out), jnp.float32, -bound, bound)
        return w, b

    w1, b1 = linear_init(k1, k2, input_size, hidden)
    w2, b2 = linear_init(k3, k4, hidden, hidden)
    w3, b3 = linear_init(k5, k6, hidden, 1)
    return {"w1": w1, "b1": b1, "w2": w2, "b2": b2, "w3": w3, "b3": b3}


def head_reference(x, params):
    """Pure-JAX reference mirroring the kernel's bf16-input / f32-accumulate numerics."""
    H = params["w1"].shape[1]
    xb = x.astype(jnp.bfloat16)
    w1 = params["w1"].astype(jnp.bfloat16)
    w2 = params["w2"].astype(jnp.bfloat16)
    w3_row = params["w3"].reshape(1, H).astype(jnp.float32)
    b3 = params["b3"].reshape(1, 1).astype(jnp.float32)

    h = jnp.dot(xb, w1, preferred_element_type=jnp.float32) + params["b1"]
    h = jnp.maximum(h, 0.0)
    h = jnp.dot(h.astype(jnp.bfloat16), w2,
                preferred_element_type=jnp.float32) + params["b2"]
    h = jnp.maximum(h, 0.0)
    h = jnp.sum(h * w3_row, axis=-1, keepdims=True) + b3
    return jnp.maximum(h, 0.0)


if __name__ == "__main__":
    key = jax.random.PRNGKey(0)
    k_params, k_x, k_x2 = jax.random.split(key, 3)

    input_size = 64   # Head(64) in FutureRewardsEstimator
    T = 16            # last T hidden states (x[-T:]); kept small for the demo

    params = init_params(k_params, input_size)
    # Stand-in for the HiddenStateEncoder/LSTM output sequence (see TODO above).
    x = jax.random.normal(k_x, (T, input_size), jnp.float32)

    out = jax.block_until_ready(head_forward(x, params))
    ref = head_reference(x, params)
    assert out.shape == (T, 1), out.shape
    assert jnp.allclose(out, ref, atol=2e-3, rtol=2e-3), "mismatch vs reference"

    # Module semantics for Heads == 1: squeeze the trailing unit dim -> [T].
    final = jax.block_until_ready(future_rewards_head(x, params))
    assert final.shape == (T,), final.shape

    # Secondary check: multi-block grid + ragged last block (exercises the
    # lane-dense (1, Bt) output path across blocks).
    B2 = 1000
    x2 = jax.random.normal(k_x2, (B2, input_size), jnp.float32)
    out2 = jax.block_until_ready(head_forward(x2, params))
    ref2 = head_reference(x2, params)
    assert out2.shape == (B2, 1), out2.shape
    assert jnp.allclose(out2, ref2, atol=2e-3, rtol=2e-3), "multi-block mismatch"

    print("KERNEL_OK")
</pallas_src>

<mosaic_0001>
module attributes {stable_mosaic.version = 11 : i64} {
  func.func @head_kernel(%arg0: i32, %arg1: memref<16x64xbf16, #tpu.memory_space<vmem>>, %arg2: memref<64x32xbf16, #tpu.memory_space<vmem>>, %arg3: memref<1x32xf32, #tpu.memory_space<vmem>>, %arg4: memref<32x32xbf16, #tpu.memory_space<vmem>>, %arg5: memref<1x32xf32, #tpu.memory_space<vmem>>, %arg6: memref<8x32xf32, #tpu.memory_space<vmem>>, %arg7: memref<1x1xf32, #tpu.memory_space<vmem>>, %arg8: memref<1x16xf32, #tpu.memory_space<vmem>>) attributes {dimension_semantics = [#tpu.dimension_semantics<parallel>], iteration_bounds = array<i64: 1>, scalar_prefetch = 0 : i64, scratch_operands = 0 : i64, tpu.core_type = #tpu.core_type<tc>, window_params = [{transform_indices = @transform_0, window_bounds = array<i64: 16, 64>}, {pipeline_mode = #tpu.pipeline_mode<synchronous>, transform_indices = @transform_1, window_bounds = array<i64: 64, 32>}, {pipeline_mode = #tpu.pipeline_mode<synchronous>, transform_indices = @transform_2, window_bounds = array<i64: 1, 32>}, {pipeline_mode = #tpu.pipeline_mode<synchronous>, transform_indices = @transform_3, window_bounds = array<i64: 32, 32>}, {pipeline_mode = #tpu.pipeline_mode<synchronous>, transform_indices = @transform_4, window_bounds = array<i64: 1, 32>}, {pipeline_mode = #tpu.pipeline_mode<synchronous>, transform_indices = @transform_5, window_bounds = array<i64: 8, 32>}, {pipeline_mode = #tpu.pipeline_mode<synchronous>, transform_indices = @transform_6, window_bounds = array<i64: 1, 1>}, {transform_indices = @transform_7, window_bounds = array<i64: 1, 16>}]} {
    %c0 = arith.constant 0 : index
    %c0_0 = arith.constant 0 : index
    %0 = vector.load %arg1[%c0, %c0_0] : memref<16x64xbf16, #tpu.memory_space<vmem>>, vector<16x64xbf16>
    %c0_1 = arith.constant 0 : index
    %c0_2 = arith.constant 0 : index
    %1 = vector.load %arg2[%c0_1, %c0_2] : memref<64x32xbf16, #tpu.memory_space<vmem>>, vector<64x32xbf16>
    %cst = arith.constant dense<0.000000e+00> : vector<16x32xf32>
    %2 = tpu.matmul %0, %1, %cst {dimension_numbers = #tpu.dot_dimension_numbers<[1], [0], [0], [1], [0, 0, 1, 1], [], []>} : vector<16x64xbf16>, vector<64x32xbf16>, vector<16x32xf32> -> vector<16x32xf32>
    %c0_3 = arith.constant 0 : index
    %c0_4 = arith.constant 0 : index
    %3 = vector.load %arg3[%c0_3, %c0_4] : memref<1x32xf32, #tpu.memory_space<vmem>>, vector<1x32xf32>
    %4 = vector.broadcast %3 : vector<1x32xf32> to vector<16x32xf32>
    %5 = arith.addf %2, %4 : vector<16x32xf32>
    %cst_5 = arith.constant 0.000000e+00 : f32
    %6 = vector.broadcast %cst_5 : f32 to vector<16x32xf32>
    %7 = arith.maximumf %5, %6 : vector<16x32xf32>
    %8 = arith.truncf %7 : vector<16x32xf32> to vector<16x32xbf16>
    %c0_6 = arith.constant 0 : index
    %c0_7 = arith.constant 0 : index
    %9 = vector.load %arg4[%c0_6, %c0_7] : memref<32x32xbf16, #tpu.memory_space<vmem>>, vector<32x32xbf16>
    %cst_8 = arith.constant dense<0.000000e+00> : vector<16x32xf32>
    %10 = tpu.matmul %8, %9, %cst_8 {dimension_numbers = #tpu.dot_dimension_numbers<[1], [0], [0], [1], [0, 0, 1, 1], [], []>} : vector<16x32xbf16>, vector<32x32xbf16>, vector<16x32xf32> -> vector<16x32xf32>
    %c0_9 = arith.constant 0 : index
    %c0_10 = arith.constant 0 : index
    %11 = vector.load %arg5[%c0_9, %c0_10] : memref<1x32xf32, #tpu.memory_space<vmem>>, vector<1x32xf32>
    %12 = vector.broadcast %11 : vector<1x32xf32> to vector<16x32xf32>
    %13 = arith.addf %10, %12 : vector<16x32xf32>
    %cst_11 = arith.constant 0.000000e+00 : f32
    %14 = vector.broadcast %cst_11 : f32 to vector<16x32xf32>
    %15 = arith.maximumf %13, %14 : vector<16x32xf32>
    %c0_12 = arith.constant 0 : index
    %c0_13 = arith.constant 0 : index
    %16 = vector.load %arg6[%c0_12, %c0_13] : memref<8x32xf32, #tpu.memory_space<vmem>>, vector<8x32xf32>
    %cst_14 = arith.constant dense<0.000000e+00> : vector<8x16xf32>
    %17 = tpu.matmul %16, %15, %cst_14 {dimension_numbers = #tpu.dot_dimension_numbers<[1], [1], [0], [0], [0, 0, 1, 0], [], []>} : vector<8x32xf32>, vector<16x32xf32>, vector<8x16xf32> -> vector<8x16xf32>
    %18 = vector.extract_strided_slice %17 {offsets = [0, 0], sizes = [1, 16], strides = [1, 1]} : vector<8x16xf32> to vector<1x16xf32>
    %c0_15 = arith.constant 0 : index
    %c0_16 = arith.constant 0 : index
    %19 = vector.load %arg7[%c0_15, %c0_16] : memref<1x1xf32, #tpu.memory_space<vmem>>, vector<1x1xf32>
    %20 = vector.broadcast %19 : vector<1x1xf32> to vector<1x16xf32>
    %21 = arith.addf %18, %20 : vector<1x16xf32>
    %cst_17 = arith.constant 0.000000e+00 : f32
    %22 = vector.broadcast %cst_17 : f32 to vector<1x16xf32>
    %23 = arith.maximumf %21, %22 : vector<1x16xf32>
    %c0_18 = arith.constant 0 : index
    %c0_19 = arith.constant 0 : index
    %24 = vector.load %arg8[%c0_18, %c0_19] : memref<1x16xf32, #tpu.memory_space<vmem>>, vector<1x16xf32>
    tpu.vector_store %arg8[%c0_18, %c0_19], %23 {strides = array<i32>} : memref<1x16xf32, #tpu.memory_space<vmem>>, vector<1x16xf32>,
    return
  }
  func.func @transform_0(%arg0: i32) -> (i32, i32) {
    %c0_i32 = arith.constant 0 : i32
    %c0_i32_0 = arith.constant 0 : i32
    return %arg0, %c0_i32 : i32, i32
  }
  func.func @transform_1(%arg0: i32) -> (i32, i32) {
    %c0_i32 = arith.constant 0 : i32
    %c0_i32_0 = arith.constant 0 : i32
    %c0_i32_1 = arith.constant 0 : i32
    return %c0_i32, %c0_i32_0 : i32, i32
  }
  func.func @transform_2(%arg0: i32) -> (i32, i32) {
    %c0_i32 = arith.constant 0 : i32
    %c0_i32_0 = arith.constant 0 : i32
    %c0_i32_1 = arith.constant 0 : i32
    return %c0_i32, %c0_i32_0 : i32, i32
  }
  func.func @transform_3(%arg0: i32) -> (i32, i32) {
    %c0_i32 = arith.constant 0 : i32
    %c0_i32_0 = arith.constant 0 : i32
    %c0_i32_1 = arith.constant 0 : i32
    return %c0_i32, %c0_i32_0 : i32, i32
  }
  func.func @transform_4(%arg0: i32) -> (i32, i32) {
    %c0_i32 = arith.constant 0 : i32
    %c0_i32_0 = arith.constant 0 : i32
    %c0_i32_1 = arith.constant 0 : i32
    return %c0_i32, %c0_i32_0 : i32, i32
  }
  func.func @transform_5(%arg0: i32) -> (i32, i32) {
    %c0_i32 = arith.constant 0 : i32
    %c0_i32_0 = arith.constant 0 : i32
    %c0_i32_1 = arith.constant 0 : i32
    return %c0_i32, %c0_i32_0 : i32, i32
  }
  func.func @transform_6(%arg0: i32) -> (i32, i32) {
    %c0_i32 = arith.constant 0 : i32
    %c0_i32_0 = arith.constant 0 : i32
    %c0_i32_1 = arith.constant 0 : i32
    return %c0_i32, %c0_i32_0 : i32, i32
  }
  func.func @transform_7(%arg0: i32) -> (i32, i32) {
    %c0_i32 = arith.constant 0 : i32
    %c0_i32_0 = arith.constant 0 : i32
    return %arg0, %c0_i32 : i32, i32
  }
}

</mosaic_0001>

<bundles_post_ra>
// kernel: tpu_custom_call.1
= control target key start
LH: loop header
LB: loop body
LE: loop exit
PB: predicated region body
PF: predicated region fallthrough
CT: control target
= control target key end

     0   :  { %s492_s0 = inlined_call_operand.vmem [shape: bf16[16,64], index: 0, kind: input, shape index: {}]   ;;  %s493_s1 = inlined_call_operand.vmem [shape: bf16[64,32], index: 1, kind: input, shape index: {}]   ;;  %s494_s2 = inlined_call_operand.vmem [shape: f32[1,32], index: 2, kind: input, shape index: {}]   ;;  %s495_s3 = inlined_call_operand.vmem [shape: bf16[32,32], index: 3, kind: input, shape index: {}]   ;;  %s496_s4 = inlined_call_operand.vmem [shape: f32[1,32], index: 4, kind: input, shape index: {}]   ;;  %s497_s5 = inlined_call_operand.vmem [shape: f32[8,32], index: 5, kind: input, shape index: {}]   ;;  %s498_s6 = inlined_call_operand.<no memory space> [shape: f32[1,1], index: 6, kind: input, shape index: {}]   ;;  %s499_s7 = inlined_call_operand.hbm [shape: f32[1,16], index: 7, kind: output, shape index: {}]  }
   0x1   :  { %v12_v0 = vstv %s498_s6 }
   0x2   :  { %13 = vst [vmem:[#allocation2] sm:$0x1] %v12_v0 }
   0x3   :  { %v364_v1 = vld [vmem:[%s493_s1] sm:$0xff]   ;;  %v395_v2 = vmov 0.0   ;;  %v365_v3 = vld [vmem:[%s493_s1 + $0x8] sm:$0xff]   ;;  %vm396_vm0 = vmmov 0   ;;  %v366_v4 = vld [vmem:[%s493_s1 + $0x10] sm:$0xff]  }
   0x4   :  { %327 = vmatprep.subr.bf16.mxu0 %v395_v2  ;;  %339 = vmatprep.subr.bf16.mxu1 %v395_v2 }
   0x5   :  { %328 = vmatpush3.bf16.msra.mxu0 %v364_v1  ;;  %335 = vmatprep.mubr.msk.bf16.mxu0 %vm396_vm0, %v395_v2 }
   0x6   :  { %329 = vmatprep.subr.bf16.mxu0 %v395_v2  ;;  %343 = vmatprep.mubr.msk.bf16.mxu1 %vm396_vm0, %v395_v2 }
   0x9   :  { %330 = vmatpush3.bf16.msra.mxu0 %v365_v3 }
   0xa   :  { %14 = vsyncpa [#allocation4], 0  ;;  %331 = vmatprep.subr.bf16.mxu0 %v395_v2  ;;  %v367_v5 = vld [vmem:[%s493_s1 + $0x18] sm:$0xff]   ;;  %v368_v6 = vld [vmem:[%s492_s0] sm:$0xff]   ;;  %vm76_vm1 = vcmask 523264   ;;  %vm147_vm2 = vcmask 261120   ;;  %v280_v33 = vlaneseq }
   0xb   :  { %v369_v7 = vld [vmem:[%s495_s3] sm:$0xff]   ;;  %v370_v8 = vld [vmem:[%s495_s3 + $0x8] sm:$0xff]   ;;  %v397_v19 = vmov 0.0|0.0   ;;  %v398_v21 = vmov 0   ;;  %vm356_vm3 = vmpackc.low %vm147_vm2, %vm147_vm2  ;;  %vm286_vm4 = vcmask 122880  }
   0xc   :  { %340 = vmatpush3.bf16.msra.mxu1 %v369_v7  ;;  %v302_v9 = vld [vmem:[%s494_s2] ss:$0 sm:$0xff]  ;;  %363 = vset.pattern.permute.xlu0 %v398_v21  ;;  %v281_v34 = vshrl.u32 %v280_v33, 7 }
   0xd   :  { %332 = vmatpush3.bf16.msra.mxu0 %v366_v4  ;;  %341 = vmatprep.subr.bf16.mxu1 %v395_v2  ;;  %v274_v20 = vld [vmem:[#allocation2] sm:$0x1] }
   0xe   :  { %333 = vmatprep.subr.bf16.mxu0 %v395_v2  ;;  %277 = vperm.xlu0 %363, %v274_v20   ;;  %v309_v22 = vld [vmem:[%s496_s4] ss:$0 sm:$0xff]  ;;  %v282_v35 = vsub.s32 0, %v281_v34  ;;  %s399_s4 = smov [#allocation3]  }
   0xf   :  { %v194_v32 = vld [vmem:[%s497_s5] sm:$0xff]  ;;  %s294_s18 = sshll.u32 %s399_s4, 4  ;;  %s295_s18 = int_to_ptr.vmem [resolvable:$true] %s294_s18 }
  0x10   :  { %342 = vmatpush3.bf16.msra.mxu1 %v370_v8  ;;  %s371_s19 = scalar_lea.vmem %s295_s18, 16  ;;  %s375_s20 = scalar_lea.vmem %s295_s18, 32 }
  0x11   :  { %334 = vmatpush3.bf16.msra.mxu0 %v367_v5  ;;  %354 = vmatprep.subr.bf16.mxu1 %v397_v19  ;;  %p372_p0 = scmp.ne.s32.totalorder %s295_s18, %s371_s19  ;;  %p376_p1 = scmp.lt.s32.totalorder %s295_s18, %s295_s18 }
  0x12   :  { %p377_p2 = scmp.lt.s32.totalorder %s375_s20, %s371_s19 }
  0x14   :  { %336 = vmatmul.mubr.msk.bf16.vlgmr.msra.gmra.mrb[0].mxu0 %vm76_vm1, %v368_v6  ;;  %p378_p3 = por %p377_p2, %p376_p1 }
  0x16   :  { %p379_p4 = pnand %p378_p3, %p372_p0 }
  0x8d   :  { %v278_v36 = vpop.permute.xlu0 %277 }
  0x8e   :  { %v283_v37 = vrot.slane %v278_v36, %v282_v35 }
  0xe7   :  { %v114_v10 = vpop.f32.mrb[0].mxu0 }
  0xe8   :  { %v115_v11 = vadd.f32 %v302_v9, %v114_v10  ;;  %v337_v12 = vpop.f32.mrb[1].mxu0 }
  0xe9   :  { %v117_v13 = vpop.f32.mrb[2].mxu0 }
  0xea   :  { %v118_v14 = vadd.f32 %v302_v9, %v117_v13  ;;  %v338_v15 = vpop.f32.mrb[3].mxu0  ;;  %v121_v16 = vmax.f32 %v115_v11, 0.0 }
  0xec   :  { %v122_v17 = vmax.f32 %v118_v14, 0.0 }
  0xee   :  { %v123_v18 = vpack.c.bf16 %v122_v17, %v121_v16 }
  0xf0   :  { %344 = vmatmul.mubr.msk.bf16.vlgmr.msra.gmra.mrb[0].mxu1 %vm147_vm2, %v123_v18 }
  0xf1   :  { %351 = vmatprep.mubr.msk.f32.mxu1 %vm396_vm0, %v395_v2 }
 0x1c3   :  { %v185_v23 = vpop.f32.mrb[0].mxu1 }
 0x1c4   :  { %v186_v24 = vadd.f32 %v309_v22, %v185_v23  ;;  %v345_v25 = vpop.f32.mrb[1].mxu1 }
 0x1c5   :  { %v188_v26 = vpop.f32.mrb[2].mxu1 }
 0x1c6   :  { %v189_v27 = vadd.f32 %v309_v22, %v188_v26  ;;  %v346_v28 = vpop.f32.mrb[3].mxu1  ;;  %v192_v29 = vmax.f32 %v186_v24, 0.0 }
 0x1c8   :  { %v193_v30 = vmax.f32 %v189_v27, 0.0 }
 0x1ca   :  { %v355_v31 = vpack.c.bf16 %v193_v30, %v192_v29 }
 0x1cc   :  { %357 = vmatpush3.bf16.xpose.msk.msra.mxu1 %vm356_vm3, %v355_v31 }
 0x1d3   :  { %352 = vmatmul.mubr.msk.f32.vlgmr.msra.gmra.mrb[4].mxu1 %vm147_vm2, %v194_v32 }
 0x2a6   :  { %v270_v38 = vpop.f32.mrb[4].mxu1 }
 0x2a7   :  { %v284_v39 = vadd.f32 %v283_v37, %v270_v38  ;;  %v353_v40 = vpop.f32.mrb[5].mxu1 }
 0x2a9   :  { %v285_v41 = vmax.f32 %v284_v39, 0.0 }
 0x2ab   :  { %287 = vst.msk [vmem:[#allocation3] sm:$0x1] %vm286_vm4, %v285_v41 }
 0x2ac   :  { %382 = shalt.err (!%p379_p4)
}
 0x2ad   :  { %s383_s22 = scalar_lea.hbm %s499_s7, 16 }
 0x2ae   :  { %p384_p5 = scmp.ne.s32.totalorder %s499_s7, %s383_s22  ;;  %p387_p6 = scmp.lt.u32.totalorder %s383_s22, %s499_s7 }
 0x2b0   :  { %p389_p7 = pnand %p387_p6, %p384_p5 }
 0x2b2   :  { %392 = shalt.err (!%p389_p7)
}
 0x2b3   :  { %297 = dma.vmem_to_hbm [thread:$0]  %s295_s18, 16, %s499_s7, [#allocation4]  }
 0x2b4   :  { %393 = dma.done.wait [#allocation4], 16  }
 0x2b5   :  { %394 = vsyncadd [#allocation4], 4294967280 }
 0x2b6   :  { %301 = vsyncpa [#allocation4], 1 }

</bundles_post_ra>
